<compile_context>
chip_gen: v5e
topology: v5e:2x2
jax: 0.10.0
libtpu: 0.0.40
codegen_flags: <defaults>
</compile_context>

<pallas_src>
import functools

import jax
import jax.numpy as jnp
from jax.experimental import pallas as pl
from jax.experimental.pallas import tpu as pltpu


_TARGET_BLOCK_BYTES = 6 * 1024 * 1024    # ~6 MiB/input block (~12 MiB double-buffered)
_VMEM_LIMIT_BYTES = 32 * 1024 * 1024     # safe on v5e/v6e/v7x; above v5e's 16 MiB default
_MAX_ROWS_PER_BLOCK = 2048               # bounds lane-padded (rows,1) out/acc buffers
_MAX_HW_TILE = 16 * 1024                 # cap per-row chunk when tiling the reduction


def _sublane_multiple(itemsize):
    # Sub-32-bit dtypes pack 2/4 rows per sublane: 8 for f32, 16 for bf16, 32 for int8.
    return max(8, (4 // max(1, itemsize)) * 8)


def _round_rows(rows, n_rows, sub):
    if rows >= n_rows:
        return n_rows                    # full extent: any size is legal
    return max(sub, (rows // sub) * sub)


def _pick_tiles(n_rows, hw, itemsize, target_bytes, sub):
    """Choose (rows_per_block, hw_tile) honoring the (8,128) BlockSpec rules.

    Guarantees block bytes (incl. sublane rounding) stay <= target_bytes and,
    when possible, that there are >= 2 row blocks (feeds both TCs on v7x).
    """
    hw_pad = -(-hw // 128) * 128         # lane-padded row footprint in VMEM
    max_rows = min(n_rows, _MAX_ROWS_PER_BLOCK)
    if n_rows >= 2 * sub:
        # Keep at least two row blocks so the "parallel" axis has work.
        max_rows = min(max_rows, max(sub, (((n_rows + 1) // 2) // sub) * sub))

    if sub * hw_pad * itemsize <= target_bytes:
        # Whole spatial extent per block -> single reduction step.
        t_hw = hw
        rows = min(max_rows, target_bytes // (hw_pad * itemsize))
        rows = _round_rows(rows, n_rows, sub)
    else:
        # Tile the reduction axis; chunk is a multiple of 128 lanes (< hw here).
        rows = _round_rows(min(max_rows, 256), n_rows, sub)
        t_hw = max(128, min(_MAX_HW_TILE,
                            (target_bytes // (rows * itemsize) // 128) * 128))
    return rows, t_hw


def _avgmax_single_kernel(x_ref, o_ref, *, inv_hw):
    """Whole H*W in one tile: one pass, no scratch, no masking."""
    # NOTE: when R % rows != 0 the last row block reads past the end of the
    # flattened input; those padded rows are reduced independently and their
    # output rows are dropped by Pallas, so valid outputs are unaffected.
    x = x_ref[...]
    s = jnp.sum(x, axis=-1, keepdims=True, dtype=jnp.float32)
    m = jnp.max(x, axis=-1, keepdims=True).astype(jnp.float32)
    o_ref[...] = (0.5 * (s * inv_hw + m)).astype(o_ref.dtype)


def _avgmax_multi_kernel(x_ref, o_ref, sum_acc, max_acc, *,
                         hw_total, rem, num_k, needs_mask):
    """Streams (rows, t_hw) tiles; f32 running sum + running max per row.

    The iota/where masking runs ONLY on the last reduction step (and only if
    the last tile is actually partial), so steady-state steps are just
    load + add + max and the kernel stays HBM-bound.
    """
    k = pl.program_id(1)

    @pl.when(k == 0)
    def _init():
        sum_acc[...] = jnp.zeros_like(sum_acc)
        max_acc[...] = jnp.full_like(max_acc, -jnp.inf)

    def _accum(x_sum, x_max):
        sum_acc[...] += jnp.sum(x_sum, axis=-1, keepdims=True, dtype=jnp.float32)
        max_acc[...] = jnp.maximum(
            max_acc[...],
            jnp.max(x_max, axis=-1, keepdims=True).astype(jnp.float32))

    if not needs_mask:
        x = x_ref[...]
        _accum(x, x)
    else:
        @pl.when(k < num_k - 1)
        def _full_step():
            x = x_ref[...]
            _accum(x, x)

        @pl.when(k == num_k - 1)
        def _masked_last_step():
            x = x_ref[...]
            lane = jax.lax.broadcasted_iota(jnp.int32, x.shape, dimension=1)
            valid = lane < rem                     # `rem` is a static constant
            _accum(jnp.where(valid, x, jnp.zeros_like(x)),
                   jnp.where(valid, x, jnp.full_like(x, -jnp.inf)))

    @pl.when(k == num_k - 1)
    def _finalize():
        avg = sum_acc[...] * (1.0 / hw_total)      # divide by the TRUE H*W
        o_ref[...] = (0.5 * (avg + max_acc[...])).astype(o_ref.dtype)


def adaptive_avgmax_pool2d(x, output_size=1, *, target_block_bytes=None):
    """0.5 * (adaptive_avg_pool2d(x, 1) + adaptive_max_pool2d(x, 1)) for NCHW x."""
    if output_size != 1:
        # TODO(synk): general adaptive bin sizes (output_size > 1) not implemented.
        raise NotImplementedError("Only output_size=1 is supported.")

    N, C, H, W = x.shape
    HW = H * W
    R = N * C
    itemsize = jnp.dtype(x.dtype).itemsize
    target = target_block_bytes or _TARGET_BLOCK_BYTES
    sub = _sublane_multiple(itemsize)
    rows, t_hw = _pick_tiles(R, HW, itemsize, target, sub)

    x_flat = x.reshape(R, HW)            # free: NCHW is contiguous over (H, W)
    num_r = pl.cdiv(R, rows)
    num_k = pl.cdiv(HW, t_hw)

    if num_k == 1:
        out = pl.pallas_call(
            functools.partial(_avgmax_single_kernel, inv_hw=1.0 / HW),
            out_shape=jax.ShapeDtypeStruct((R, 1), x.dtype),
            grid_spec=pltpu.PrefetchScalarGridSpec(
                num_scalar_prefetch=0,
                grid=(num_r,),
                in_specs=[pl.BlockSpec((rows, HW), lambda r: (r, 0))],
                out_specs=pl.BlockSpec((rows, 1), lambda r: (r, 0)),
            ),
            compiler_params=pltpu.CompilerParams(
                dimension_semantics=("parallel",),
                vmem_limit_bytes=_VMEM_LIMIT_BYTES),
        )(x_flat)
    else:
        rem = HW - (num_k - 1) * t_hw    # valid lanes in the last spatial tile
        kernel = functools.partial(
            _avgmax_multi_kernel, hw_total=HW, rem=rem, num_k=num_k,
            needs_mask=(rem != t_hw))
        out = pl.pallas_call(
            kernel,
            out_shape=jax.ShapeDtypeStruct((R, 1), x.dtype),
            grid_spec=pltpu.PrefetchScalarGridSpec(
                num_scalar_prefetch=0,
                grid=(num_r, num_k),
                in_specs=[pl.BlockSpec((rows, t_hw), lambda r, k: (r, k))],
                out_specs=pl.BlockSpec((rows, 1), lambda r, k: (r, 0)),
                scratch_shapes=[pltpu.VMEM((rows, 1), jnp.float32),   # running sum
                                pltpu.VMEM((rows, 1), jnp.float32)],  # running max
            ),
            compiler_params=pltpu.CompilerParams(
                dimension_semantics=("parallel", "arbitrary"),
                vmem_limit_bytes=_VMEM_LIMIT_BYTES),
        )(x_flat)

    return out.reshape(N, C, 1, 1)


class AdaptiveAvgMaxPool2d:
    def __init__(self, output_size=1):
        self.output_size = output_size

    def __call__(self, x):
        return adaptive_avgmax_pool2d(x, self.output_size)


def _reference(x):
    xf = x.astype(jnp.float32)
    return 0.5 * (jnp.mean(xf, axis=(2, 3), keepdims=True)
                  + jnp.max(xf, axis=(2, 3), keepdims=True))


if __name__ == "__main__":
    key = jax.random.PRNGKey(0)

    # 1) Basic f32 check (single-step path, one row block).
    x = jax.random.normal(key, (2, 4, 16, 16), dtype=jnp.float32)
    module = AdaptiveAvgMaxPool2d(output_size=1)
    y = jax.block_until_ready(module(x))
    assert y.shape == (2, 4, 1, 1)
    assert jnp.allclose(y, _reference(x), atol=1e-5, rtol=1e-5)

    # 2) Single-step path with multiple row blocks (parallel row axis).
    x1 = jax.random.normal(jax.random.PRNGKey(1), (2, 32, 16, 16), dtype=jnp.float32)
    y1 = jax.block_until_ready(adaptive_avgmax_pool2d(x1, 1))
    assert jnp.allclose(y1, _reference(x1), atol=1e-5, rtol=1e-5)

    # 3) Force multi-step spatial tiling with a partial (masked) last tile + row blocks.
    x2 = jax.random.normal(jax.random.PRNGKey(0), (2, 8, 20, 20), dtype=jnp.float32)
    y2 = jax.block_until_ready(
        adaptive_avgmax_pool2d(x2, 1, target_block_bytes=4096))
    assert jnp.allclose(y2, _reference(x2), atol=1e-5, rtol=1e-5)

    # 4) bf16, single-step path.
    x3 = jax.random.normal(key, (2, 4, 16, 16), dtype=jnp.bfloat16)
    y3 = jax.block_until_ready(module(x3))
    assert jnp.allclose(y3.astype(jnp.float32), _reference(x3), atol=2e-2, rtol=2e-2)

    # 5) bf16, multi-step masked path (f32 accumulation, 16-row sublane packing).
    x4 = jax.random.normal(jax.random.PRNGKey(2), (2, 8, 20, 20), dtype=jnp.bfloat16)
    y4 = jax.block_until_ready(
        adaptive_avgmax_pool2d(x4, 1, target_block_bytes=4096))
    assert jnp.allclose(y4.astype(jnp.float32), _reference(x4), atol=2e-2, rtol=2e-2)

    print("KERNEL_OK")
</pallas_src>

<mosaic_0001>
module attributes {stable_mosaic.version = 11 : i64} {
  func.func @_avgmax_single_kernel(%arg0: i32, %arg1: memref<8x256xf32, #tpu.memory_space<vmem>>, %arg2: memref<8x1xf32, #tpu.memory_space<vmem>>) attributes {dimension_semantics = [#tpu.dimension_semantics<parallel>], iteration_bounds = array<i64: 1>, scalar_prefetch = 0 : i64, scratch_operands = 0 : i64, tpu.core_type = #tpu.core_type<tc>, window_params = [{transform_indices = @transform_0, window_bounds = array<i64: 8, 256>}, {transform_indices = @transform_1, window_bounds = array<i64: 8, 1>}]} {
    %c0 = arith.constant 0 : index
    %c0_0 = arith.constant 0 : index
    %0 = vector.load %arg1[%c0, %c0_0] : memref<8x256xf32, #tpu.memory_space<vmem>>, vector<8x256xf32>
    %cst = arith.constant dense<0.000000e+00> : vector<8xf32>
    %1 = vector.multi_reduction <add>, %0, %cst [1] : vector<8x256xf32> to vector<8xf32>
    %2 = vector.shape_cast %1 : vector<8xf32> to vector<8x1xf32>
    %cst_1 = arith.constant dense<0xFF800000> : vector<8xf32>
    %3 = vector.multi_reduction <maximumf>, %0, %cst_1 [1] : vector<8x256xf32> to vector<8xf32>
    %4 = vector.shape_cast %3 : vector<8xf32> to vector<8x1xf32>
    %cst_2 = arith.constant 3.906250e-03 : f32
    %5 = vector.broadcast %cst_2 : f32 to vector<8x1xf32>
    %6 = arith.mulf %2, %5 : vector<8x1xf32>
    %7 = arith.addf %6, %4 : vector<8x1xf32>
    %cst_3 = arith.constant 5.000000e-01 : f32
    %8 = vector.broadcast %cst_3 : f32 to vector<8x1xf32>
    %9 = arith.mulf %8, %7 : vector<8x1xf32>
    %c0_4 = arith.constant 0 : index
    %c0_5 = arith.constant 0 : index
    %10 = vector.load %arg2[%c0_4, %c0_5] : memref<8x1xf32, #tpu.memory_space<vmem>>, vector<8x1xf32>
    tpu.vector_store %arg2[%c0_4, %c0_5], %9 {strides = array<i32>} : memref<8x1xf32, #tpu.memory_space<vmem>>, vector<8x1xf32>,
    return
  }
  func.func @transform_0(%arg0: i32) -> (i32, i32) {
    %c0_i32 = arith.constant 0 : i32
    %c0_i32_0 = arith.constant 0 : i32
    return %arg0, %c0_i32 : i32, i32
  }
  func.func @transform_1(%arg0: i32) -> (i32, i32) {
    %c0_i32 = arith.constant 0 : i32
    %c0_i32_0 = arith.constant 0 : i32
    return %arg0, %c0_i32 : i32, i32
  }
}

</mosaic_0001>

<bundles_post_ra>
// kernel: tpu_custom_call.1
= control target key start
LH: loop header
LB: loop body
LE: loop exit
PB: predicated region body
PF: predicated region fallthrough
CT: control target
= control target key end

     0   :  { %6 = vsyncpa [#allocation3], 0  ;;  %s67_s9 = smov [#allocation2]   ;;  %s84_s0 = inlined_call_operand.hbm [shape: f32[8,256], index: 0, kind: input, shape index: {}]   ;;  %s85_s1 = inlined_call_operand.vmem [shape: f32[8,1], index: 1, kind: output, shape index: {}]  }
   0x1   :  { %s12_s8 = sshll.u32 %s84_s0, 4  ;;  %s14_s10 = sshll.u32 %s67_s9, 4  ;;  %s13_s8 = int_to_ptr.hbm [resolvable:$true] %s12_s8  ;;  %s15_s10 = int_to_ptr.vmem [resolvable:$true] %s14_s10 }
   0x2   :  { %17 = dma.hbm_to_vmem [thread:$0]  %s13_s8, 256, %s15_s10, [#allocation3]  }
   0x3   :  { %65 = dma.done.wait [#allocation3], 256  }
   0x4   :  { %66 = vsyncadd [#allocation3], 4294967040  ;;  %v22_v0 = vld [vmem:[#allocation2] sm:$0xff]  ;;  %v23_v1 = vld [vmem:[#allocation2 + $0x8] sm:$0xff]  ;;  %vm33_vm0 = vcmask 7168  }
   0x5   :  { %v24_v2 = vadd.f32 %v23_v1, %v22_v0  ;;  %v27_v3 = vmax.f32 %v22_v0, %v23_v1 }
   0x7   :  { %25 = vadd.xlane.f32.xlu0 %v24_v2 }
   0xf   :  { %28 = vmax.xlane.f32.xlu0 %v27_v3 }
  0x7a   :  { %v26_v4 = vpop.xlane.xlu0 %25 }
  0x7b   :  { %v30_v5 = vmul.f32 0.00390625, %v26_v4 }
  0x82   :  { %v29_v6 = vpop.xlane.xlu0 %28 }
  0x83   :  { %v31_v7 = vadd.f32 %v30_v5, %v29_v6 }
  0x85   :  { %v32_v8 = vmul.f32 0.5, %v31_v7 }
  0x87   :  { %34 = vst.msk [vmem:[%s85_s1] sm:$0xff] %vm33_vm0, %v32_v8 }
  0x88   :  { %39 = vsyncpa [#allocation3], 1 }

</bundles_post_ra>
